<compile_context>
chip_gen: v6e
topology: v6e:2x2x1
jax: 0.10.0
libtpu: 0.0.40
codegen_flags: <defaults>
</compile_context>

<pallas_src>
import functools

import jax
import jax.numpy as jnp
from jax.experimental import pallas as pl
from jax.experimental.pallas import tpu as pltpu


_VMEM_LIMIT = 48 * 1024 * 1024  # stays within v7x's 64 MiB physical VMEM


# ------------------------------ helpers -------------------------------------

def _pick_tile(n, target):
    """Largest tile <= target dividing n; prefer multiples of 16, then 8, else full n."""
    if n <= target:
        return n
    for t in range(target - target % 16, 0, -16):
        if t > 0 and n % t == 0:
            return t
    for t in range(target - target % 8, 0, -8):
        if t > 0 and n % t == 0:
            return t
    return n


# ------------------------------ kernels -------------------------------------

def _qkv_proj_kernel(x_ref, w_ref, b_ref, gq_ref, gk_ref, q_ref, k_ref, v_ref, *,
                     num_heads, head_dim, eps, scale, use_rms_norm):
    # One (batch, seq-tile) step: single wide matmul (tm, Din) @ (Din, 3D), bf16 operands,
    # fp32 accumulation; the bf16 weight block has a constant index_map (stays resident).
    x = x_ref[0].astype(jnp.bfloat16)                                  # (tm, Din) bf16
    qkv = jnp.dot(x, w_ref[...], preferred_element_type=jnp.float32)   # (tm, 3D) fp32
    qkv = qkv + b_ref[...]                                             # bias in fp32

    D = num_heads * head_dim
    for h in range(num_heads):                                         # static head split
        lo = h * head_dim
        q = qkv[:, lo:lo + head_dim]                                   # (tm, Dh) fp32
        k = qkv[:, D + lo:D + lo + head_dim]
        v = qkv[:, 2 * D + lo:2 * D + lo + head_dim]
        if use_rms_norm:
            # RMSNorm over head_dim (per head), fp32 variance, elementwise affine.
            q = q * jax.lax.rsqrt(jnp.mean(jnp.square(q), axis=-1, keepdims=True) + eps)
            q = q * gq_ref[...]
            k = k * jax.lax.rsqrt(jnp.mean(jnp.square(k), axis=-1, keepdims=True) + eps)
            k = k * gk_ref[...]
        # Fold the softmax scale into q here (fp32, Lq*Dh mults instead of Lq*Lk later).
        q_ref[0, h] = (q * scale).astype(q_ref.dtype)
        k_ref[0, h] = k.astype(k_ref.dtype)
        v_ref[0, h] = v.astype(v_ref.dtype)


def _flash_attn_kernel(q_ref, k_ref, v_ref, o_ref, m_sc, l_sc, acc_sc):
    # One (batch, q-tile, kv-tile) step over ALL heads (batched einsum).
    # q is already pre-scaled by 1/sqrt(Dh).
    ki = pl.program_id(2)

    @pl.when(ki == 0)
    def _():
        m_sc[...] = jnp.full_like(m_sc, -jnp.inf)
        l_sc[...] = jnp.zeros_like(l_sc)
        acc_sc[...] = jnp.zeros_like(acc_sc)

    q = q_ref[0]                                                       # (H, tq, Dh) bf16
    k = k_ref[0]                                                       # (H, tk, Dh) bf16
    v = v_ref[0]                                                       # (H, tk, Dh) bf16

    # Contract last dims -> transposed-RHS MXU matmuls, no explicit k.T.
    s = jnp.einsum('hqd,hkd->hqk', q, k,
                   preferred_element_type=jnp.float32)                 # (H, tq, tk) fp32

    m_prev = m_sc[...]
    m_new = jnp.maximum(m_prev, jnp.max(s, axis=-1, keepdims=True))
    alpha = jnp.exp(m_prev - m_new)
    p = jnp.exp(s - m_new)
    l_sc[...] = alpha * l_sc[...] + jnp.sum(p, axis=-1, keepdims=True)
    acc_sc[...] = alpha * acc_sc[...] + jnp.einsum(
        'hqk,hkd->hqd', p.astype(v.dtype), v, preferred_element_type=jnp.float32)
    m_sc[...] = m_new

    @pl.when(ki == pl.num_programs(2) - 1)
    def _():
        H, _, Dh = acc_sc.shape
        inv = pl.reciprocal(l_sc[...], approx=True)                    # EUP slot
        out = acc_sc[...] * inv                                        # (H, tq, Dh) fp32
        # Head-merge into the lane-dense (tq, D) output block (unmasked HBM store).
        for h in range(H):
            o_ref[0, :, h * Dh:(h + 1) * Dh] = out[h].astype(o_ref.dtype)


def _out_proj_kernel(a_ref, w_ref, b_ref, o_ref):
    # Single full-depth matmul per seq tile: (tm, D) bf16 @ (D, D) bf16 -> fp32.
    a = a_ref[0]                                                       # (tm, D) bf16
    o = jnp.dot(a, w_ref[...], preferred_element_type=jnp.float32) + b_ref[...]
    o_ref[0] = o.astype(o_ref.dtype)


# ------------------------------ wrappers -------------------------------------

def qkv_projection(x, w_qkv_t, b_qkv, g_q, g_k, *, num_heads, head_dim,
                   use_rms_norm, eps=1e-6, seq_tile=256):
    B, L, Din = x.shape
    H, Dh = num_heads, head_dim
    D3 = w_qkv_t.shape[1]
    tm = _pick_tile(L, seq_tile)
    scale = float(head_dim) ** -0.5
    qkv_shape = jax.ShapeDtypeStruct((B, H, L, Dh), jnp.bfloat16)
    out_spec = pl.BlockSpec((1, H, tm, Dh), lambda b, i: (b, 0, i, 0))
    kernel = functools.partial(_qkv_proj_kernel, num_heads=H, head_dim=Dh,
                               eps=eps, scale=scale, use_rms_norm=use_rms_norm)
    return pl.pallas_call(
        kernel,
        out_shape=(qkv_shape, qkv_shape, qkv_shape),
        grid=(B, L // tm),
        in_specs=[
            pl.BlockSpec((1, tm, Din), lambda b, i: (b, i, 0)),        # x tile
            pl.BlockSpec((Din, D3), lambda b, i: (0, 0)),              # resident bf16 Wqkv
            pl.BlockSpec((1, D3), lambda b, i: (0, 0)),                # bias (fp32)
            pl.BlockSpec((1, Dh), lambda b, i: (0, 0)),                # RMSNorm gamma q
            pl.BlockSpec((1, Dh), lambda b, i: (0, 0)),                # RMSNorm gamma k
        ],
        out_specs=(out_spec, out_spec, out_spec),
        compiler_params=pltpu.CompilerParams(
            dimension_semantics=("parallel", "parallel"),
            vmem_limit_bytes=_VMEM_LIMIT),
    )(x, w_qkv_t, b_qkv, g_q, g_k)


def flash_attention(q, k, v, *, q_tile=256, kv_tile=512):
    """Online-softmax attention over (B, H, L, Dh) bf16 tensors (q pre-scaled).

    Output is emitted head-merged as (B, L, H*Dh) bf16 (lane-dense stores), ready to be
    fed directly into the wide output projection.
    """
    B, H, L, Dh = q.shape
    D = H * Dh
    tq = _pick_tile(L, q_tile)
    tk = _pick_tile(L, kv_tile)
    return pl.pallas_call(
        _flash_attn_kernel,
        out_shape=jax.ShapeDtypeStruct((B, L, D), jnp.bfloat16),
        grid=(B, L // tq, L // tk),
        in_specs=[
            pl.BlockSpec((1, H, tq, Dh), lambda b, qi, ki: (b, 0, qi, 0)),
            pl.BlockSpec((1, H, tk, Dh), lambda b, qi, ki: (b, 0, ki, 0)),
            pl.BlockSpec((1, H, tk, Dh), lambda b, qi, ki: (b, 0, ki, 0)),
        ],
        out_specs=pl.BlockSpec((1, tq, D), lambda b, qi, ki: (b, qi, 0)),
        scratch_shapes=[
            pltpu.VMEM((H, tq, 1), jnp.float32),     # running max
            pltpu.VMEM((H, tq, 1), jnp.float32),     # running denom
            pltpu.VMEM((H, tq, Dh), jnp.float32),    # running numerator
        ],
        compiler_params=pltpu.CompilerParams(
            dimension_semantics=("parallel", "parallel", "arbitrary"),
            vmem_limit_bytes=_VMEM_LIMIT),
    )(q, k, v)


def out_projection(a, w_out_t, b_out, *, seq_tile=256):
    """a_to_out Linear on the head-merged (B, L, D) attention output."""
    B, L, D = a.shape
    tm = _pick_tile(L, seq_tile)
    return pl.pallas_call(
        _out_proj_kernel,
        out_shape=jax.ShapeDtypeStruct((B, L, D), jnp.float32),
        grid=(B, L // tm),
        in_specs=[
            pl.BlockSpec((1, tm, D), lambda b, i: (b, i, 0)),          # attn out tile (bf16)
            pl.BlockSpec((D, D), lambda b, i: (0, 0)),                 # resident bf16 Wout
            pl.BlockSpec((1, D), lambda b, i: (0, 0)),                 # bias (fp32)
        ],
        out_specs=pl.BlockSpec((1, tm, D), lambda b, i: (b, i, 0)),
        compiler_params=pltpu.CompilerParams(
            dimension_semantics=("parallel", "parallel"),
            vmem_limit_bytes=_VMEM_LIMIT),
    )(a, w_out_t, b_out)


def single_attention_forward(x, p, *, num_heads, head_dim, use_rms_norm, eps=1e-6):
    q, k, v = qkv_projection(
        x, p["w_qkv_t"], p["b_qkv"], p["g_q"], p["g_k"],
        num_heads=num_heads, head_dim=head_dim, use_rms_norm=use_rms_norm, eps=eps)
    a = flash_attention(q, k, v)
    return out_projection(a, p["w_out_t"], p["b_out"])


# ---------------------- one-time weight preparation --------------------------

def prepare_params(raw):
    """Pre-transpose + bf16-cast PyTorch-layout weights once (no w.T per forward)."""
    return {
        "w_qkv_t": raw["w_qkv"].T.astype(jnp.bfloat16),    # (Din, 3D) bf16, resident
        "b_qkv": raw["b_qkv"].reshape(1, -1),              # (1, 3D) fp32
        "w_out_t": raw["w_out"].T.astype(jnp.bfloat16),    # (D, D) bf16, resident
        "b_out": raw["b_out"].reshape(1, -1),              # (1, D) fp32
        "g_q": raw["g_q"].reshape(1, -1),                  # (1, Dh) fp32
        "g_k": raw["g_k"].reshape(1, -1),                  # (1, Dh) fp32
    }


# ------------------------------ reference ------------------------------------

def _reference_forward(x, raw, num_heads, head_dim, use_rms_norm, eps=1e-6):
    B, L, D = x.shape
    qkv = x @ raw["w_qkv"].T + raw["b_qkv"]
    qkv = qkv.reshape(B, L, 3 * num_heads, head_dim).transpose(0, 2, 1, 3)
    q, k, v = jnp.split(qkv, 3, axis=1)
    if use_rms_norm:
        def rms(t, g):
            var = jnp.mean(jnp.square(t), axis=-1, keepdims=True)
            return t * jax.lax.rsqrt(var + eps) * g
        q = rms(q, raw["g_q"])
        k = rms(k, raw["g_k"])
    s = jnp.einsum("bhqd,bhkd->bhqk", q, k) / jnp.sqrt(jnp.float32(head_dim))
    p = jax.nn.softmax(s, axis=-1)
    o = jnp.einsum("bhqk,bhkd->bhqd", p, v)
    o = o.transpose(0, 2, 1, 3).reshape(B, L, num_heads * head_dim)
    return o @ raw["w_out"].T + raw["b_out"]


# -------------------------------- main ----------------------------------------

if __name__ == "__main__":
    num_heads, head_dim = 4, 8
    dim = num_heads * head_dim        # 32
    batch, seq = 2, 16

    key = jax.random.PRNGKey(0)
    kx, kw = jax.random.split(key)
    x = jax.random.normal(kx, (batch, seq, dim), jnp.float32)

    ks = jax.random.split(kw, 4)
    s = 1.0 / (dim ** 0.5)
    raw = {
        "w_qkv": jax.random.uniform(ks[0], (3 * dim, dim), jnp.float32, -s, s),
        "b_qkv": jax.random.uniform(ks[1], (3 * dim,), jnp.float32, -s, s),
        "w_out": jax.random.uniform(ks[2], (dim, dim), jnp.float32, -s, s),
        "b_out": jax.random.uniform(ks[3], (dim,), jnp.float32, -s, s),
        "g_q": jnp.ones((head_dim,), jnp.float32),   # RMSNorm weights init to ones
        "g_k": jnp.ones((head_dim,), jnp.float32),
    }
    params = prepare_params(raw)

    for use_rms_norm in (False, True):               # module default False + norm path
        out = single_attention_forward(x, params, num_heads=num_heads,
                                       head_dim=head_dim, use_rms_norm=use_rms_norm)
        jax.block_until_ready(out)
        assert out.shape == (batch, seq, dim)
        ref = _reference_forward(x, raw, num_heads, head_dim, use_rms_norm)
        assert jnp.allclose(out, ref, atol=5e-2, rtol=5e-2), \
            float(jnp.max(jnp.abs(out - ref)))

    print("KERNEL_OK")
</pallas_src>

<mosaic_0001>
module attributes {stable_mosaic.version = 11 : i64} {
  func.func @_qkv_proj_kernel(%arg0: i32, %arg1: i32, %arg2: memref<1x16x32xf32, #tpu.memory_space<vmem>>, %arg3: memref<32x96xbf16, #tpu.memory_space<vmem>>, %arg4: memref<1x96xf32, #tpu.memory_space<vmem>>, %arg5: memref<1x8xf32, #tpu.memory_space<vmem>>, %arg6: memref<1x8xf32, #tpu.memory_space<vmem>>, %arg7: memref<1x4x16x8xbf16, #tpu.memory_space<vmem>>, %arg8: memref<1x4x16x8xbf16, #tpu.memory_space<vmem>>, %arg9: memref<1x4x16x8xbf16, #tpu.memory_space<vmem>>) attributes {dimension_semantics = [#tpu.dimension_semantics<parallel>, #tpu.dimension_semantics<parallel>], iteration_bounds = array<i64: 2, 1>, scalar_prefetch = 0 : i64, scratch_operands = 0 : i64, tpu.core_type = #tpu.core_type<tc>, window_params = [{transform_indices = @transform_0, window_bounds = array<i64: 1, 16, 32>}, {pipeline_mode = #tpu.pipeline_mode<synchronous>, transform_indices = @transform_1, window_bounds = array<i64: 32, 96>}, {pipeline_mode = #tpu.pipeline_mode<synchronous>, transform_indices = @transform_2, window_bounds = array<i64: 1, 96>}, {pipeline_mode = #tpu.pipeline_mode<synchronous>, transform_indices = @transform_3, window_bounds = array<i64: 1, 8>}, {pipeline_mode = #tpu.pipeline_mode<synchronous>, transform_indices = @transform_4, window_bounds = array<i64: 1, 8>}, {transform_indices = @transform_5, window_bounds = array<i64: 1, 4, 16, 8>}, {transform_indices = @transform_6, window_bounds = array<i64: 1, 4, 16, 8>}, {transform_indices = @transform_7, window_bounds = array<i64: 1, 4, 16, 8>}]} {
    %c0 = arith.constant 0 : index
    %c0_0 = arith.constant 0 : index
    %c0_1 = arith.constant 0 : index
    %0 = vector.load %arg2[%c0, %c0_0, %c0_1] : memref<1x16x32xf32, #tpu.memory_space<vmem>>, vector<1x16x32xf32>
    %1 = vector.shape_cast %0 : vector<1x16x32xf32> to vector<16x32xf32>
    %2 = arith.truncf %1 : vector<16x32xf32> to vector<16x32xbf16>
    %c0_2 = arith.constant 0 : index
    %c0_3 = arith.constant 0 : index
    %3 = vector.load %arg3[%c0_2, %c0_3] : memref<32x96xbf16, #tpu.memory_space<vmem>>, vector<32x96xbf16>
    %cst = arith.constant dense<0.000000e+00> : vector<16x96xf32>
    %4 = tpu.matmul %2, %3, %cst {dimension_numbers = #tpu.dot_dimension_numbers<[1], [0], [0], [1], [0, 0, 1, 1], [], []>} : vector<16x32xbf16>, vector<32x96xbf16>, vector<16x96xf32> -> vector<16x96xf32>
    %c0_4 = arith.constant 0 : index
    %c0_5 = arith.constant 0 : index
    %5 = vector.load %arg4[%c0_4, %c0_5] : memref<1x96xf32, #tpu.memory_space<vmem>>, vector<1x96xf32>
    %6 = vector.broadcast %5 : vector<1x96xf32> to vector<16x96xf32>
    %7 = arith.addf %4, %6 : vector<16x96xf32>
    %8 = vector.extract_strided_slice %7 {offsets = [0, 0], sizes = [16, 8], strides = [1, 1]} : vector<16x96xf32> to vector<16x8xf32>
    %9 = vector.extract_strided_slice %7 {offsets = [0, 32], sizes = [16, 8], strides = [1, 1]} : vector<16x96xf32> to vector<16x8xf32>
    %10 = vector.extract_strided_slice %7 {offsets = [0, 64], sizes = [16, 8], strides = [1, 1]} : vector<16x96xf32> to vector<16x8xf32>
    %cst_6 = arith.constant 0.353553385 : f32
    %11 = vector.broadcast %cst_6 : f32 to vector<16x8xf32>
    %12 = arith.mulf %8, %11 : vector<16x8xf32>
    %13 = arith.truncf %12 : vector<16x8xf32> to vector<16x8xbf16>
    %c0_7 = arith.constant 0 : index
    %c0_8 = arith.constant 0 : index
    %c0_9 = arith.constant 0 : index
    %c0_10 = arith.constant 0 : index
    %14 = vector.load %arg7[%c0_7, %c0_8, %c0_9, %c0_10] : memref<1x4x16x8xbf16, #tpu.memory_space<vmem>>, vector<1x1x16x8xbf16>
    %15 = vector.shape_cast %14 : vector<1x1x16x8xbf16> to vector<16x8xbf16>
    %16 = vector.shape_cast %13 : vector<16x8xbf16> to vector<1x1x16x8xbf16>
    tpu.vector_store %arg7[%c0_7, %c0_8, %c0_9, %c0_10], %16 {strides = array<i32>} : memref<1x4x16x8xbf16, #tpu.memory_space<vmem>>, vector<1x1x16x8xbf16>,
    %17 = arith.truncf %9 : vector<16x8xf32> to vector<16x8xbf16>
    %c0_11 = arith.constant 0 : index
    %c0_12 = arith.constant 0 : index
    %c0_13 = arith.constant 0 : index
    %c0_14 = arith.constant 0 : index
    %18 = vector.load %arg8[%c0_11, %c0_12, %c0_13, %c0_14] : memref<1x4x16x8xbf16, #tpu.memory_space<vmem>>, vector<1x1x16x8xbf16>
    %19 = vector.shape_cast %18 : vector<1x1x16x8xbf16> to vector<16x8xbf16>
    %20 = vector.shape_cast %17 : vector<16x8xbf16> to vector<1x1x16x8xbf16>
    tpu.vector_store %arg8[%c0_11, %c0_12, %c0_13, %c0_14], %20 {strides = array<i32>} : memref<1x4x16x8xbf16, #tpu.memory_space<vmem>>, vector<1x1x16x8xbf16>,
    %21 = arith.truncf %10 : vector<16x8xf32> to vector<16x8xbf16>
    %c0_15 = arith.constant 0 : index
    %c0_16 = arith.constant 0 : index
    %c0_17 = arith.constant 0 : index
    %c0_18 = arith.constant 0 : index
    %22 = vector.load %arg9[%c0_15, %c0_16, %c0_17, %c0_18] : memref<1x4x16x8xbf16, #tpu.memory_space<vmem>>, vector<1x1x16x8xbf16>
    %23 = vector.shape_cast %22 : vector<1x1x16x8xbf16> to vector<16x8xbf16>
    %24 = vector.shape_cast %21 : vector<16x8xbf16> to vector<1x1x16x8xbf16>
    tpu.vector_store %arg9[%c0_15, %c0_16, %c0_17, %c0_18], %24 {strides = array<i32>} : memref<1x4x16x8xbf16, #tpu.memory_space<vmem>>, vector<1x1x16x8xbf16>,
    %25 = vector.extract_strided_slice %7 {offsets = [0, 8], sizes = [16, 8], strides = [1, 1]} : vector<16x96xf32> to vector<16x8xf32>
    %26 = vector.extract_strided_slice %7 {offsets = [0, 40], sizes = [16, 8], strides = [1, 1]} : vector<16x96xf32> to vector<16x8xf32>
    %27 = vector.extract_strided_slice %7 {offsets = [0, 72], sizes = [16, 8], strides = [1, 1]} : vector<16x96xf32> to vector<16x8xf32>
    %cst_19 = arith.constant 0.353553385 : f32
    %28 = vector.broadcast %cst_19 : f32 to vector<16x8xf32>
    %29 = arith.mulf %25, %28 : vector<16x8xf32>
    %30 = arith.truncf %29 : vector<16x8xf32> to vector<16x8xbf16>
    %c0_20 = arith.constant 0 : index
    %c1 = arith.constant 1 : index
    %c0_21 = arith.constant 0 : index
    %c0_22 = arith.constant 0 : index
    %31 = vector.load %arg7[%c0_20, %c1, %c0_21, %c0_22] : memref<1x4x16x8xbf16, #tpu.memory_space<vmem>>, vector<1x1x16x8xbf16>
    %32 = vector.shape_cast %31 : vector<1x1x16x8xbf16> to vector<16x8xbf16>
    %33 = vector.shape_cast %30 : vector<16x8xbf16> to vector<1x1x16x8xbf16>
    tpu.vector_store %arg7[%c0_20, %c1, %c0_21, %c0_22], %33 {strides = array<i32>} : memref<1x4x16x8xbf16, #tpu.memory_space<vmem>>, vector<1x1x16x8xbf16>,
    %34 = arith.truncf %26 : vector<16x8xf32> to vector<16x8xbf16>
    %c0_23 = arith.constant 0 : index
    %c1_24 = arith.constant 1 : index
    %c0_25 = arith.constant 0 : index
    %c0_26 = arith.constant 0 : index
    %35 = vector.load %arg8[%c0_23, %c1_24, %c0_25, %c0_26] : memref<1x4x16x8xbf16, #tpu.memory_space<vmem>>, vector<1x1x16x8xbf16>
    %36 = vector.shape_cast %35 : vector<1x1x16x8xbf16> to vector<16x8xbf16>
    %37 = vector.shape_cast %34 : vector<16x8xbf16> to vector<1x1x16x8xbf16>
    tpu.vector_store %arg8[%c0_23, %c1_24, %c0_25, %c0_26], %37 {strides = array<i32>} : memref<1x4x16x8xbf16, #tpu.memory_space<vmem>>, vector<1x1x16x8xbf16>,
    %38 = arith.truncf %27 : vector<16x8xf32> to vector<16x8xbf16>
    %c0_27 = arith.constant 0 : index
    %c1_28 = arith.constant 1 : index
    %c0_29 = arith.constant 0 : index
    %c0_30 = arith.constant 0 : index
    %39 = vector.load %arg9[%c0_27, %c1_28, %c0_29, %c0_30] : memref<1x4x16x8xbf16, #tpu.memory_space<vmem>>, vector<1x1x16x8xbf16>
    %40 = vector.shape_cast %39 : vector<1x1x16x8xbf16> to vector<16x8xbf16>
    %41 = vector.shape_cast %38 : vector<16x8xbf16> to vector<1x1x16x8xbf16>
    tpu.vector_store %arg9[%c0_27, %c1_28, %c0_29, %c0_30], %41 {strides = array<i32>} : memref<1x4x16x8xbf16, #tpu.memory_space<vmem>>, vector<1x1x16x8xbf16>,
    %42 = vector.extract_strided_slice %7 {offsets = [0, 16], sizes = [16, 8], strides = [1, 1]} : vector<16x96xf32> to vector<16x8xf32>
    %43 = vector.extract_strided_slice %7 {offsets = [0, 48], sizes = [16, 8], strides = [1, 1]} : vector<16x96xf32> to vector<16x8xf32>
    %44 = vector.extract_strided_slice %7 {offsets = [0, 80], sizes = [16, 8], strides = [1, 1]} : vector<16x96xf32> to vector<16x8xf32>
    %cst_31 = arith.constant 0.353553385 : f32
    %45 = vector.broadcast %cst_31 : f32 to vector<16x8xf32>
    %46 = arith.mulf %42, %45 : vector<16x8xf32>
    %47 = arith.truncf %46 : vector<16x8xf32> to vector<16x8xbf16>
    %c0_32 = arith.constant 0 : index
    %c2 = arith.constant 2 : index
    %c0_33 = arith.constant 0 : index
    %c0_34 = arith.constant 0 : index
    %48 = vector.load %arg7[%c0_32, %c2, %c0_33, %c0_34] : memref<1x4x16x8xbf16, #tpu.memory_space<vmem>>, vector<1x1x16x8xbf16>
    %49 = vector.shape_cast %48 : vector<1x1x16x8xbf16> to vector<16x8xbf16>
    %50 = vector.shape_cast %47 : vector<16x8xbf16> to vector<1x1x16x8xbf16>
    tpu.vector_store %arg7[%c0_32, %c2, %c0_33, %c0_34], %50 {strides = array<i32>} : memref<1x4x16x8xbf16, #tpu.memory_space<vmem>>, vector<1x1x16x8xbf16>,
    %51 = arith.truncf %43 : vector<16x8xf32> to vector<16x8xbf16>
    %c0_35 = arith.constant 0 : index
    %c2_36 = arith.constant 2 : index
    %c0_37 = arith.constant 0 : index
    %c0_38 = arith.constant 0 : index
    %52 = vector.load %arg8[%c0_35, %c2_36, %c0_37, %c0_38] : memref<1x4x16x8xbf16, #tpu.memory_space<vmem>>, vector<1x1x16x8xbf16>
    %53 = vector.shape_cast %52 : vector<1x1x16x8xbf16> to vector<16x8xbf16>
    %54 = vector.shape_cast %51 : vector<16x8xbf16> to vector<1x1x16x8xbf16>
    tpu.vector_store %arg8[%c0_35, %c2_36, %c0_37, %c0_38], %54 {strides = array<i32>} : memref<1x4x16x8xbf16, #tpu.memory_space<vmem>>, vector<1x1x16x8xbf16>,
    %55 = arith.truncf %44 : vector<16x8xf32> to vector<16x8xbf16>
    %c0_39 = arith.constant 0 : index
    %c2_40 = arith.constant 2 : index
    %c0_41 = arith.constant 0 : index
    %c0_42 = arith.constant 0 : index
    %56 = vector.load %arg9[%c0_39, %c2_40, %c0_41, %c0_42] : memref<1x4x16x8xbf16, #tpu.memory_space<vmem>>, vector<1x1x16x8xbf16>
    %57 = vector.shape_cast %56 : vector<1x1x16x8xbf16> to vector<16x8xbf16>
    %58 = vector.shape_cast %55 : vector<16x8xbf16> to vector<1x1x16x8xbf16>
    tpu.vector_store %arg9[%c0_39, %c2_40, %c0_41, %c0_42], %58 {strides = array<i32>} : memref<1x4x16x8xbf16, #tpu.memory_space<vmem>>, vector<1x1x16x8xbf16>,
    %59 = vector.extract_strided_slice %7 {offsets = [0, 24], sizes = [16, 8], strides = [1, 1]} : vector<16x96xf32> to vector<16x8xf32>
    %60 = vector.extract_strided_slice %7 {offsets = [0, 56], sizes = [16, 8], strides = [1, 1]} : vector<16x96xf32> to vector<16x8xf32>
    %61 = vector.extract_strided_slice %7 {offsets = [0, 88], sizes = [16, 8], strides = [1, 1]} : vector<16x96xf32> to vector<16x8xf32>
    %cst_43 = arith.constant 0.353553385 : f32
    %62 = vector.broadcast %cst_43 : f32 to vector<16x8xf32>
    %63 = arith.mulf %59, %62 : vector<16x8xf32>
    %64 = arith.truncf %63 : vector<16x8xf32> to vector<16x8xbf16>
    %c0_44 = arith.constant 0 : index
    %c3 = arith.constant 3 : index
    %c0_45 = arith.constant 0 : index
    %c0_46 = arith.constant 0 : index
    %65 = vector.load %arg7[%c0_44, %c3, %c0_45, %c0_46] : memref<1x4x16x8xbf16, #tpu.memory_space<vmem>>, vector<1x1x16x8xbf16>
    %66 = vector.shape_cast %65 : vector<1x1x16x8xbf16> to vector<16x8xbf16>
    %67 = vector.shape_cast %64 : vector<16x8xbf16> to vector<1x1x16x8xbf16>
    tpu.vector_store %arg7[%c0_44, %c3, %c0_45, %c0_46], %67 {strides = array<i32>} : memref<1x4x16x8xbf16, #tpu.memory_space<vmem>>, vector<1x1x16x8xbf16>,
    %68 = arith.truncf %60 : vector<16x8xf32> to vector<16x8xbf16>
    %c0_47 = arith.constant 0 : index
    %c3_48 = arith.constant 3 : index
    %c0_49 = arith.constant 0 : index
    %c0_50 = arith.constant 0 : index
    %69 = vector.load %arg8[%c0_47, %c3_48, %c0_49, %c0_50] : memref<1x4x16x8xbf16, #tpu.memory_space<vmem>>, vector<1x1x16x8xbf16>
    %70 = vector.shape_cast %69 : vector<1x1x16x8xbf16> to vector<16x8xbf16>
    %71 = vector.shape_cast %68 : vector<16x8xbf16> to vector<1x1x16x8xbf16>
    tpu.vector_store %arg8[%c0_47, %c3_48, %c0_49, %c0_50], %71 {strides = array<i32>} : memref<1x4x16x8xbf16, #tpu.memory_space<vmem>>, vector<1x1x16x8xbf16>,
    %72 = arith.truncf %61 : vector<16x8xf32> to vector<16x8xbf16>
    %c0_51 = arith.constant 0 : index
    %c3_52 = arith.constant 3 : index
    %c0_53 = arith.constant 0 : index
    %c0_54 = arith.constant 0 : index
    %73 = vector.load %arg9[%c0_51, %c3_52, %c0_53, %c0_54] : memref<1x4x16x8xbf16, #tpu.memory_space<vmem>>, vector<1x1x16x8xbf16>
    %74 = vector.shape_cast %73 : vector<1x1x16x8xbf16> to vector<16x8xbf16>
    %75 = vector.shape_cast %72 : vector<16x8xbf16> to vector<1x1x16x8xbf16>
    tpu.vector_store %arg9[%c0_51, %c3_52, %c0_53, %c0_54], %75 {strides = array<i32>} : memref<1x4x16x8xbf16, #tpu.memory_space<vmem>>, vector<1x1x16x8xbf16>,
    return
  }
  func.func @transform_0(%arg0: i32, %arg1: i32) -> (i32, i32, i32) {
    %c0_i32 = arith.constant 0 : i32
    %c0_i32_0 = arith.constant 0 : i32
    return %arg0, %arg1, %c0_i32 : i32, i32, i32
  }
  func.func @transform_1(%arg0: i32, %arg1: i32) -> (i32, i32) {
    %c0_i32 = arith.constant 0 : i32
    %c0_i32_0 = arith.constant 0 : i32
    %c0_i32_1 = arith.constant 0 : i32
    return %c0_i32, %c0_i32_0 : i32, i32
  }
  func.func @transform_2(%arg0: i32, %arg1: i32) -> (i32, i32) {
    %c0_i32 = arith.constant 0 : i32
    %c0_i32_0 = arith.constant 0 : i32
    %c0_i32_1 = arith.constant 0 : i32
    return %c0_i32, %c0_i32_0 : i32, i32
  }
  func.func @transform_3(%arg0: i32, %arg1: i32) -> (i32, i32) {
    %c0_i32 = arith.constant 0 : i32
    %c0_i32_0 = arith.constant 0 : i32
    %c0_i32_1 = arith.constant 0 : i32
    return %c0_i32, %c0_i32_0 : i32, i32
  }
  func.func @transform_4(%arg0: i32, %arg1: i32) -> (i32, i32) {
    %c0_i32 = arith.constant 0 : i32
    %c0_i32_0 = arith.constant 0 : i32
    %c0_i32_1 = arith.constant 0 : i32
    return %c0_i32, %c0_i32_0 : i32, i32
  }
  func.func @transform_5(%arg0: i32, %arg1: i32) -> (i32, i32, i32, i32) {
    %c0_i32 = arith.constant 0 : i32
    %c0_i32_0 = arith.constant 0 : i32
    %c0_i32_1 = arith.constant 0 : i32
    return %arg0, %c0_i32, %arg1, %c0_i32_0 : i32, i32, i32, i32
  }
  func.func @transform_6(%arg0: i32, %arg1: i32) -> (i32, i32, i32, i32) {
    %c0_i32 = arith.constant 0 : i32
    %c0_i32_0 = arith.constant 0 : i32
    %c0_i32_1 = arith.constant 0 : i32
    return %arg0, %c0_i32, %arg1, %c0_i32_0 : i32, i32, i32, i32
  }
  func.func @transform_7(%arg0: i32, %arg1: i32) -> (i32, i32, i32, i32) {
    %c0_i32 = arith.constant 0 : i32
    %c0_i32_0 = arith.constant 0 : i32
    %c0_i32_1 = arith.constant 0 : i32
    return %arg0, %c0_i32, %arg1, %c0_i32_0 : i32, i32, i32, i32
  }
}

</mosaic_0001>

<bundles_post_ra>
// kernel: tpu_custom_call.1
= control target key start
LH: loop header
LB: loop body
LE: loop exit
PB: predicated region body
PF: predicated region fallthrough
CT: control target
= control target key end

     0   :  { %13 = vsyncpa [#allocation3], 0  ;;  %s1291_s0 = inlined_call_operand.hbm [shape: f32[2,16,32], index: 0, kind: input, shape index: {}]   ;;  %s1292_s1 = inlined_call_operand.hbm [shape: bf16[32,96], index: 1, kind: input, shape index: {}]   ;;  %s1293_s2 = inlined_call_operand.vmem [shape: f32[1,96], index: 2, kind: input, shape index: {}]   ;;  %s1294_s3 = inlined_call_operand.vmem [shape: f32[1,8], index: 3, kind: input, shape index: {}]   ;;  %s1295_s4 = inlined_call_operand.vmem [shape: f32[1,8], index: 4, kind: input, shape index: {}]   ;;  %s1296_s5 = inlined_call_operand.vmem [shape: bf16[2,4,16,8], index: 5, kind: output, shape index: {0}]   ;;  %s1297_s6 = inlined_call_operand.vmem [shape: bf16[2,4,16,8], index: 6, kind: output, shape index: {1}]   ;;  %s1298_s7 = inlined_call_operand.vmem [shape: bf16[2,4,16,8], index: 7, kind: output, shape index: {2}]  }
   0x1   :  { %15 = vsyncpa [#allocation3 + $0x1], 0 }
   0x2   :  { %16 = vsyncpa [#allocation5], 0  ;;  %s1100_s24 = smov 0   ;;  %s1102_s25 = smov 0  }
   0x3   :  { %s1104_s3 = smov 0   ;;  %s1106_s26 = smov 0  }
   0x4   :  { %s1108_s4 = smov 0   ;;  %s1110_s27 = smov 0  }
   0x5 LB: > { %s782_s28 = sadd.s32 4294967295, %s1039_s27   ;;  %p56_p0 = scmp.ne.s32.totalorder %s1023_s25, %s1019_s24  ;;  %s1039_s27 = sphi %s1110_s27, %s22_s27   ;;  %s1035_s4 = sphi %s1108_s4, %s1308_s4   ;;  %s1031_s26 = sphi %s1106_s26, %s1307_s26   ;;  %s1027_s3 = sphi %s1104_s3, %s1306_s3   ;;  %s1023_s25 = sphi %s1102_s25, %s1305_s25   ;;  %s1019_s24 = sphi %s1100_s24, %s1304_s24  }
   0x6   : > { %p1130_p1 = scmp.eq.s32.totalorder %s782_s28, 0  ;;  %p784_p2 = scmp.ge.s32.totalorder %s1039_s27, 1 }
   0x7   : > { %p235_p3 = scmp.lt.s32.totalorder %s1039_s27, 3  ;;  %s1041_s9 = smov [#allocation4]  }
   0x8   : > { %p1138_p4 = por %p1130_p1, %p56_p0  ;;  %s247_s10 = sshll.u32 %s1041_s9, 4  ;;  %s248_s10 = int_to_ptr.vmem [resolvable:$true] %s247_s10 }
   0x9   : > { %p1142_p5 = pnand %p784_p2, %p235_p3  ;;  %s34_s12 = sadd.s32 1, %s1035_s4 }
   0xa   : > { %s942_s13 = scalar_lea.vmem %s248_s10, 256  ;;  %p950_p12 = scmp.lt.s32.totalorder %s248_s10, %s248_s10 }
   0xb   : > { %p852_p6 = pneg %p1142_p5  ;;  %p943_p9 = scmp.ne.s32.totalorder %s248_s10, %s942_s13 }
   0xc   : > { %p951_p13 = scmp.lt.s32.totalorder %s942_s13, %s942_s13 }
   0xd   : > { %p1150_p7 = pnand %p852_p6, %p1130_p1 }
   0xe   : > { %p952_p0 = por %p951_p13, %p950_p12 }
   0xf   : > { %p933_p8 = pneg %p1150_p7 }
  0x11   : > { %p945_p10 = pnand %p943_p9, %p933_p8 }
  0x13   : > { %p946_p11 = pneg %p945_p10 }
  0x15   : > { %p953_p2 = pnand %p952_p0, %p946_p11 }
  0x17   : > { %956 = shalt.err (!%p953_p2)
}
  0x18   : > { %s1042_s14 = smov 64   ;;  %s1043_s15 = smov 4  }
  0x19   : > { %855 = dma.hbm_to_vmem [thread:$0]  (!%p1150_p7), %s1292_s1, 256, %s248_s10, [#allocation5], %s1042_s14, %s1042_s14, %s1043_s15  }
  0x1a   : > { %p36_p3 = scmp.ge.s32.totalorder %s34_s12, 2  ;;  %s43_s18 = sadd.s32 1, %s1027_s3 }
  0x1b   : > { %p50_p6 = scmp.ne.s32.totalorder %s1027_s3, %s1023_s25  ;;  %p51_p8 = scmp.eq.s32.totalorder %s1039_s27, 0 }
  0x1c   : > { %s1310_s12 = smov (%p36_p3, %s34_s12), 0  ;;  %p861_p10 = scmp.lt.s32.totalorder %s1039_s27, 2 }
  0x1d   : > { %p52_p9 = por %p51_p8, %p50_p6  ;;  %s38_s19 = ssub.s32 %s1035_s4, %s1310_s12 }
  0x1e   : > { %s270_s20 = sand.u32 1, %s1027_s3   ;;  %p41_p11 = scmp.eq.s32.totalorder %s38_s19, 0 }
  0x1f   : > { %s787_s21 = sshll.u32 %s270_s20, 4  ;;  %s827_s22 = sshll.u32 %s1035_s4, 8 }
  0x20   : > { %s1174_s23 = scalar_select %p41_p11, %s1027_s3, %s43_s18  }
  0x21   : > { %s282_s9 = scalar_lea.hbm %s1291_s0, %s827_s22  ;;  %s274_s10 = scalar_lea.vmem [#allocation2], %s787_s21 }
  0x22   : > { %s283_s11 = sshll.u32 %s274_s10, 4  ;;  %p1179_p7 = pnand %p861_p10, %p52_p9  ;;  %s284_s11 = int_to_ptr.vmem [resolvable:$true] %s283_s11 }
  0x23   : > { %s271_s14 = scalar_lea.sflag [#allocation3], %s270_s20  ;;  %s970_s15 = scalar_lea.vmem %s284_s11, 256 }
  0x24   : > { %p959_p12 = pneg %p1179_p7  ;;  %p971_p13 = scmp.ne.s32.totalorder %s284_s11, %s970_s15 }
  0x25   : > { %s1044_s16 = smov [#allocation2]  }
  0x26   : > { %p973_p0 = pnand %p971_p13, %p959_p12  ;;  %s975_s17 = sshll.u32 %s1044_s16, 4  ;;  %s976_s17 = int_to_ptr.vmem [resolvable:$false] %s975_s17 }
  0x27   : > { %s977_s18 = scalar_lea.vmem %s976_s17, 512  ;;  %p978_p3 = scmp.lt.s32.totalorder %s284_s11, %s976_s17 }
  0x28   : > { %p974_p2 = pneg %p973_p0  ;;  %p979_p6 = scmp.lt.s32.totalorder %s977_s18, %s970_s15 }
  0x2a   : > { %p980_p8 = por %p979_p6, %p978_p3 }
  0x2c   : > { %p981_p9 = pnand %p980_p8, %p974_p2 }
  0x2e   : > { %984 = shalt.err (!%p981_p9)
}
  0x2f   : > { %s1045_s19 = smov 128   ;;  %s1046_s21 = smov 8  }
  0x30   : > { %859 = dma.hbm_to_vmem [thread:$0]  (!%p1179_p7), %s282_s9, 256, %s284_s11, %s271_s14, %s1045_s19, %s1045_s19, %s1046_s21  }
  0x31   : > { %295 = sbr.rel (%p1142_p5) target bundleno = 419 (0x1a3), region = 40  ;;  %s297_s20 = sand.u32 (!%p1142_p5), 1, %s1023_s25  }
  0x32   : > { %s791_s22 = sshll.u32 (!%p1142_p5), %s297_s20, 4  ;;  %s298_s24 = scalar_lea.sflag (!%p1142_p5), [#allocation3], %s297_s20 }
  0x33   : > { %s301_s28 = scalar_lea.vmem (!%p1142_p5), [#allocation2], %s791_s22 }
  0x36   : > { %1010 = dma.done.wait (%p1138_p4), %s298_s24, 256  }
  0x37   : > { %1012 = vsyncadd (%p1138_p4), %s298_s24, 4294967040 }
  0x38   : > { %1014 = dma.done.wait (%p1130_p1), [#allocation5], 256  }
  0x39   : > { %1016 = vsyncadd (%p1130_p1), [#allocation5], 4294967040  ;;  %v1047_v0 = vmov 0.0   ;;  %vm1048_vm0 = vmmov 0   ;;  %v929_v1 = vld [vmem:[#allocation4 + $0x8] sm:$0xff]   ;;  %v930_v2 = vld [vmem:[#allocation4] sm:$0xff]  }
  0x3a   : > { %838 = vmatprep.subr.bf16.mxu0 %v1047_v0  ;;  %842 = vmatprep.mubr.msk.bf16.mxu0 %vm1048_vm0, %v1047_v0  ;;  %v390_v3 = vld [vmem:[%s301_s28] sm:$0xff]  ;;  %v391_v4 = vld [vmem:[%s301_s28 + $0x8] sm:$0xff]  ;;  %vm416_vm1 = vcmask 261120   ;;  %p360_p4 = scmp.lt.s32.totalorder %s1031_s26, 1  ;;  %vm471_vm2 = vcmask 60416   ;;  %s1049_s13 = smov 64  }
  0x3b   : > { %839 = vmatpush3.bf16.msra.mxu0 %v929_v1  ;;  %v392_v5 = vpack.c.bf16 %v391_v4, %v390_v3  ;;  %v799_v6 = vld [vmem:[%s1293_s2] ss:$0 sm:$0xff]  ;;  %s1051_s14 = smov 88   ;;  %s1052_s15 = smov 56  }
  0x3c   : > { %840 = vmatprep.subr.bf16.mxu0 %v1047_v0  ;;  %s1312_s26 = smov (!%p360_p4, %s1031_s26), 1  ;;  %s1053_s16 = smov 80  }
  0x3d   : > { %s1203_s8 = sshll.u32 %s1312_s26, 5  ;;  %s1050_s26 = smov 96  }
  0x3e   : > { %s1209_s11 = scalar_lea.vmem %s1296_s5, %s1203_s8  ;;  %s1054_s17 = smov 48  }
  0x3f   : > { %841 = vmatpush3.bf16.msra.mxu0 %v930_v2  ;;  %s1055_s18 = smov 72   ;;  %s1056_s19 = smov 120  }
  0x40   : > { %s1057_s21 = smov 112   ;;  %s1058_s20 = smov 104  }
  0x41   : > { %s1059_s22 = smov 40   ;;  %s1221_s29 = scalar_lea.vmem %s1298_s7, %s1203_s8 }
  0x42   : > { %843 = vmatmul.mubr.msk.bf16.vlgmr.msra.gmra.mxu0 %vm416_vm1, %v392_v5  ;;  %s1227_s10 = scalar_lea.vmem %s1297_s6, %s1203_s8 }
 0x102   : > { %v454_v7 = vpop.f32.mrf.mxu0 }
 0x103   : > { %v455_v8 = vadd.f32 %v799_v6, %v454_v7 }
 0x104   : > { %v844_v9 = vpop.f32.mrf.mxu0 }
 0x105   : > { %v461_v10 = vmul.f32 0.35355338, %v455_v8  ;;  %v833_v11 = vpack.c.bf16 %v455_v8, %v455_v8 }
 0x106   : > { %v457_v12 = vpop.f32.mrf.mxu0 }
 0x107   : > { %v831_v13 = vpack.c.bf16 %v461_v10, %v461_v10  ;;  %v458_v14 = vadd.f32 %v799_v6, %v457_v12  ;;  %488 = vrot.lane.b32.xlu1 %v833_v11, %s1049_s13  ;;  %480 = vrot.lane.b32.xlu0 %v833_v11, %s1050_s26 }
 0x108   : > { %v845_v15 = vpop.f32.mrf.mxu0 }
 0x109   : > { %472 = vst.msk [vmem:[%s1209_s11] sm:$0xf] %vm471_vm2, %v831_v13  ;;  %v462_v16 = vmul.f32 0.35355338, %v458_v14  ;;  %v834_v17 = vpack.c.bf16 %v458_v14, %v458_v14 }
 0x10b   : > { %v832_v18 = vpack.c.bf16 %v462_v16, %v462_v16  ;;  %505 = vrot.lane.b32.xlu0 %v833_v11, %s1051_s14  ;;  %490 = vrot.lane.b32.xlu1 %v834_v17, %s1049_s13 }
 0x10d   : > { %473 = vst.msk [vmem:[%s1209_s11 + $0x4] sm:$0xf] %vm471_vm2, %v832_v18 }
 0x10f   : > { %514 = vrot.lane.b32.xlu0 %v833_v11, %s1052_s15  ;;  %507 = vrot.lane.b32.xlu1 %v834_v17, %s1051_s14 }
 0x113   : > { %532 = vrot.lane.b32.xlu0 %v833_v11, %s1053_s16  ;;  %516 = vrot.lane.b32.xlu1 %v834_v17, %s1052_s15 }
 0x117   : > { %541 = vrot.lane.b32.xlu0 %v833_v11, %s1054_s17  ;;  %534 = vrot.lane.b32.xlu1 %v834_v17, %s1053_s16 }
 0x11b   : > { %559 = vrot.lane.b32.xlu0 %v833_v11, %s1055_s18  ;;  %543 = vrot.lane.b32.xlu1 %v834_v17, %s1054_s17 }
 0x11f   : > { %496 = vrot.lane.b32.xlu0 %v831_v13, %s1056_s19  ;;  %561 = vrot.lane.b32.xlu1 %v834_v17, %s1055_s18 }
 0x123   : > { %523 = vrot.lane.b32.xlu0 %v831_v13, %s1057_s21  ;;  %498 = vrot.lane.b32.xlu1 %v832_v18, %s1056_s19 }
 0x127   : > { %550 = vrot.lane.b32.xlu0 %v831_v13, %s1058_s20  ;;  %525 = vrot.lane.b32.xlu1 %v832_v18, %s1057_s21 }
 0x12b   : > { %482 = vrot.lane.b32.xlu0 %v834_v17, %s1050_s26  ;;  %552 = vrot.lane.b32.xlu1 %v832_v18, %s1058_s20 }
 0x12f   : > { %568 = vrot.lane.b32.xlu0 %v833_v11, %s1059_s22  ;;  %570 = vrot.lane.b32.xlu1 %v834_v17, %s1059_s22 }
 0x179   : > { %v489_v19 = vpop.permute.xlu1 %488  ;;  %v481_v20 = vpop.permute.xlu0 %480 }
 0x17a   : > { %494 = vst.msk [vmem:[%s1221_s29] sm:$0xf] %vm471_vm2, %v489_v19  ;;  %486 = vst.msk [vmem:[%s1227_s10] sm:$0xf] %vm471_vm2, %v481_v20 }
 0x17d   : > { %v506_v21 = vpop.permute.xlu0 %505  ;;  %v491_v22 = vpop.permute.xlu1 %490 }
 0x17e   : > { %809 = vst.msk [vmem:[%s1227_s10 + $0x8] sm:$0xf] %vm471_vm2, %v506_v21  ;;  %495 = vst.msk [vmem:[%s1221_s29 + $0x4] sm:$0xf] %vm471_vm2, %v491_v22 }
 0x181   : > { %v515_v23 = vpop.permute.xlu0 %514  ;;  %v508_v24 = vpop.permute.xlu1 %507 }
 0x182   : > { %811 = vst.msk [vmem:[%s1221_s29 + $0x8] sm:$0xf] %vm471_vm2, %v515_v23  ;;  %810 = vst.msk [vmem:[%s1227_s10 + $0xc] sm:$0xf] %vm471_vm2, %v508_v24 }
 0x185   : > { %v533_v25 = vpop.permute.xlu0 %532  ;;  %v517_v26 = vpop.permute.xlu1 %516 }
 0x186   : > { %815 = vst.msk [vmem:[%s1227_s10 + $0x10] sm:$0xf] %vm471_vm2, %v533_v25  ;;  %812 = vst.msk [vmem:[%s1221_s29 + $0xc] sm:$0xf] %vm471_vm2, %v517_v26 }
 0x189   : > { %v542_v27 = vpop.permute.xlu0 %541  ;;  %v535_v28 = vpop.permute.xlu1 %534 }
 0x18a   : > { %817 = vst.msk [vmem:[%s1221_s29 + $0x10] sm:$0xf] %vm471_vm2, %v542_v27  ;;  %816 = vst.msk [vmem:[%s1227_s10 + $0x14] sm:$0xf] %vm471_vm2, %v535_v28 }
 0x18d   : > { %v560_v29 = vpop.permute.xlu0 %559  ;;  %v544_v30 = vpop.permute.xlu1 %543 }
 0x18e   : > { %821 = vst.msk [vmem:[%s1227_s10 + $0x18] sm:$0xf] %vm471_vm2, %v560_v29  ;;  %818 = vst.msk [vmem:[%s1221_s29 + $0x14] sm:$0xf] %vm471_vm2, %v544_v30 }
 0x191   : > { %v497_v31 = vpop.permute.xlu0 %496  ;;  %v562_v32 = vpop.permute.xlu1 %561 }
 0x192   : > { %807 = vst.msk [vmem:[%s1209_s11 + $0x8] sm:$0xf] %vm471_vm2, %v497_v31  ;;  %822 = vst.msk [vmem:[%s1227_s10 + $0x1c] sm:$0xf] %vm471_vm2, %v562_v32 }
 0x195   : > { %v524_v33 = vpop.permute.xlu0 %523  ;;  %v499_v34 = vpop.permute.xlu1 %498 }
 0x196   : > { %813 = vst.msk [vmem:[%s1209_s11 + $0x10] sm:$0xf] %vm471_vm2, %v524_v33  ;;  %808 = vst.msk [vmem:[%s1209_s11 + $0xc] sm:$0xf] %vm471_vm2, %v499_v34 }
 0x199   : > { %v551_v35 = vpop.permute.xlu0 %550  ;;  %v526_v36 = vpop.permute.xlu1 %525 }
 0x19a   : > { %819 = vst.msk [vmem:[%s1209_s11 + $0x18] sm:$0xf] %vm471_vm2, %v551_v35  ;;  %814 = vst.msk [vmem:[%s1209_s11 + $0x14] sm:$0xf] %vm471_vm2, %v526_v36 }
 0x19d   : > { %v483_v37 = vpop.permute.xlu0 %482  ;;  %v553_v38 = vpop.permute.xlu1 %552 }
 0x19e   : > { %487 = vst.msk [vmem:[%s1227_s10 + $0x4] sm:$0xf] %vm471_vm2, %v483_v37  ;;  %820 = vst.msk [vmem:[%s1209_s11 + $0x1c] sm:$0xf] %vm471_vm2, %v553_v38 }
 0x1a1   : > { %v569_v39 = vpop.permute.xlu0 %568  ;;  %v571_v40 = vpop.permute.xlu1 %570 }
 0x1a2   : > { %823 = vst.msk [vmem:[%s1221_s29 + $0x18] sm:$0xf] %vm471_vm2, %v569_v39  ;;  %824 = vst.msk [vmem:[%s1221_s29 + $0x1c] sm:$0xf] %vm471_vm2, %v571_v40 }
 0x1a3 PF: > { %s22_s27 = sadd.s32 1, %s1039_s27   ;;  %s1304_s24 = smov %s1023_s25 }
 0x1a4   : > { %p19_p1 = scmp.ge.s32.totalorder %s22_s27, 4   ;;  %s1305_s25 = smov %s1027_s3 }
 0x1a5   : > { %s1306_s3 = smov %s1174_s23  ;;  %s1307_s26 = smov %s1035_s4 }
 0x1a6   : > { %s1308_s4 = smov %s1310_s12  ;;  %21 = sbr.rel (!%p19_p1) target bundleno = 5 (0x5), region = 117 }
 0x1ab   :  { %657 = vsyncpa [#allocation3], 1 }
 0x1ac   :  { %659 = vsyncpa [#allocation3 + $0x1], 1 }
 0x1ad   :  { %660 = vsyncpa [#allocation5], 1 }

</bundles_post_ra>
